<compile_context>
chip_gen: v7x
topology: tpu7x:2x2x1
jax: 0.10.0
libtpu: 0.0.40
codegen_flags: <defaults>
</compile_context>

<pallas_src>
import jax
import jax.numpy as jnp
from jax.experimental import pallas as pl
from jax.experimental.pallas import tpu as pltpu

LANES = 128
IN_FEATURES = 16
SAMPLES_PER_ROW = LANES                       # 128 samples per packed row
ROW_WIDTH = SAMPLES_PER_ROW * IN_FEATURES     # 2048 lanes per packed row


def fused_mlp_kernel(x_ref, s_ref, b_ref, o_ref):
    """One grid step: lane-dense in, lane-dense out.

    x_ref: [tile_rows, 2048]  -- 128 samples x 16 features per row (pipelined)
    s_ref: [2048, 128]        -- kron(I_128, w_fused), resident across the grid
    b_ref: [1, 1] (SMEM)      -- fused scalar bias
    o_ref: [tile_rows, 128]   -- one output per sample, lane-dense
    """
    y = jnp.dot(x_ref[...], s_ref[...], preferred_element_type=jnp.float32)
    o_ref[...] = (y + b_ref[0, 0]).astype(o_ref.dtype)


def _forward_packed(x, w1, b1, w2, b2, *, block_rows=128):
    """Returns the packed kernel output [n_rows, 128] (sample-major row order)."""
    B, in_f = x.shape
    assert in_f == IN_FEATURES, "Model_0 expects 16 input features"

    # ---- Fuse the two Linears algebraically (no nonlinearity between) ----
    w = w1.astype(jnp.float32) @ w2.astype(jnp.float32)                  # [16, 1]
    b = (b1.astype(jnp.float32) @ w2.astype(jnp.float32)
         + b2.astype(jnp.float32)).reshape(1, 1)                         # [1, 1]
    # Block-diagonal expansion: S[16*L + f, L] = w[f]   ->   [2048, 128]
    s = jnp.kron(jnp.eye(SAMPLES_PER_ROW, dtype=jnp.float32), w)

    # ---- Repack x into lane-dense 2048-wide rows (128 samples per row) ----
    # TODO(synk): ideally the upstream producer emits x already lane-dense; a
    # [B, 16] f32 array is lane-padded in TPU HBM layout, so this single fused
    # pad+reshape relayout pass cannot be removed from inside the kernel.
    b_pad = -(-B // SAMPLES_PER_ROW) * SAMPLES_PER_ROW
    x_p = x if b_pad == B else jnp.pad(x, ((0, b_pad - B), (0, 0)))
    n_rows = b_pad // SAMPLES_PER_ROW
    x_r = x_p.reshape(n_rows, ROW_WIDTH)

    # ---- Tile sizing: big tiles, but keep >= 2 grid blocks when possible ----
    if n_rows <= 8:
        tile_rows = n_rows                     # single block, full extent
    else:
        tile_rows = max(8, (min(block_rows, n_rows) // 8) * 8)
        if -(-n_rows // tile_rows) < 2:        # v7x: shard across both TCs
            tile_rows = max(8, ((n_rows + 1) // 2) // 8 * 8)
    num_blocks = -(-n_rows // tile_rows)       # ragged tail -> masked OOB writes

    cost = pl.CostEstimate(
        flops=2 * B * IN_FEATURES,             # useful flops (near-zero)
        transcendentals=0,
        bytes_accessed=x_r.size * 4 + n_rows * LANES * 4 + s.size * 4,
    )

    out = pl.pallas_call(
        fused_mlp_kernel,
        out_shape=jax.ShapeDtypeStruct((n_rows, LANES), jnp.float32),
        grid=(num_blocks,),
        in_specs=[
            pl.BlockSpec((tile_rows, ROW_WIDTH), lambda i: (i, 0)),   # x, pipelined
            pl.BlockSpec((ROW_WIDTH, LANES), lambda i: (0, 0)),       # fused weight, resident
            pl.BlockSpec(memory_space=pltpu.MemorySpace.SMEM),        # scalar bias
        ],
        out_specs=pl.BlockSpec((tile_rows, LANES), lambda i: (i, 0)),
        compiler_params=pltpu.CompilerParams(
            dimension_semantics=("parallel",)),
        cost_estimate=cost,
    )(x_r, s, b)
    return out


def model_0_forward(x, w1, b1, w2, b2, *, block_rows=128):
    """x: [B, 16]; w1: [16, 8]; b1: [1, 8]; w2: [8, 1]; b2: [1, 1] -> [B, 1]."""
    B = x.shape[0]
    out_packed = _forward_packed(x, w1, b1, w2, b2, block_rows=block_rows)
    # [B, 1] only to mirror the PyTorch module; prefer consuming out_packed /
    # the flat [B] downstream to avoid the lane-padded [B, 1] materialization.
    return out_packed.reshape(-1)[:B].reshape(B, 1).astype(x.dtype)


if __name__ == "__main__":
    key = jax.random.PRNGKey(0)
    k_x, k_w1, k_b1, k_w2, k_b2 = jax.random.split(key, 5)

    IN, HID, OUT = 16, 8, 1

    # Deterministic parameters ([in, out] layout so the math is x @ W + b).
    w1 = jax.random.normal(k_w1, (IN, HID), dtype=jnp.float32) * (1.0 / jnp.sqrt(IN))
    b1 = jax.random.normal(k_b1, (1, HID), dtype=jnp.float32) * 0.01
    w2 = jax.random.normal(k_w2, (HID, OUT), dtype=jnp.float32) * (1.0 / jnp.sqrt(HID))
    b2 = jax.random.normal(k_b2, (1, OUT), dtype=jnp.float32) * 0.01

    def ref(x):
        return (x @ w1 + b1) @ w2 + b2

    # Tiny batch: single 1-row block, heavy row padding.
    x_small = jax.random.normal(k_x, (8, IN), dtype=jnp.float32)
    y_small = jax.block_until_ready(model_0_forward(x_small, w1, b1, w2, b2))
    assert y_small.shape == (8, OUT), y_small.shape
    assert jnp.allclose(y_small, ref(x_small), atol=1e-4, rtol=1e-4), "small mismatch"

    # Batch not divisible by 128, single 8-row block.
    x_mid = jax.random.normal(k_x, (1000, IN), dtype=jnp.float32)
    y_mid = jax.block_until_ready(model_0_forward(x_mid, w1, b1, w2, b2))
    assert y_mid.shape == (1000, OUT), y_mid.shape
    assert jnp.allclose(y_mid, ref(x_mid), atol=1e-4, rtol=1e-4), "mid mismatch"

    # Multi-block parallel grid with a ragged last block (masked OOB writes)
    # and the >=2-block (megacore) tile cap exercised via the default tiling.
    x_big = jax.random.normal(k_x, (5000, IN), dtype=jnp.float32)
    y_big = jax.block_until_ready(model_0_forward(x_big, w1, b1, w2, b2))
    assert y_big.shape == (5000, OUT), y_big.shape
    assert jnp.allclose(y_big, ref(x_big), atol=1e-4, rtol=1e-4), "big mismatch"

    print("KERNEL_OK")
</pallas_src>

<mosaic_0001>
module attributes {stable_mosaic.version = 11 : i64} {
  func.func @fused_mlp_kernel(%arg0: i32, %arg1: memref<1x2048xf32, #tpu.memory_space<vmem>>, %arg2: memref<2048x128xf32, #tpu.memory_space<vmem>>, %arg3: memref<1x1xf32, #tpu.memory_space<smem>>, %arg4: memref<1x128xf32, #tpu.memory_space<vmem>>) attributes {dimension_semantics = [#tpu.dimension_semantics<parallel>], iteration_bounds = array<i64: 1>, scalar_prefetch = 0 : i64, scratch_operands = 0 : i64, tpu.core_type = #tpu.core_type<tc>, window_params = [{transform_indices = @transform_0, window_bounds = array<i64: 1, 2048>}, {pipeline_mode = #tpu.pipeline_mode<synchronous>, transform_indices = @transform_1, window_bounds = array<i64: 2048, 128>}, {transform_indices = @transform_2, window_bounds = array<i64: 1, 1>}, {transform_indices = @transform_3, window_bounds = array<i64: 1, 128>}]} {
    %c0 = arith.constant 0 : index
    %c0_0 = arith.constant 0 : index
    %0 = vector.load %arg1[%c0, %c0_0] : memref<1x2048xf32, #tpu.memory_space<vmem>>, vector<1x2048xf32>
    %c0_1 = arith.constant 0 : index
    %c0_2 = arith.constant 0 : index
    %1 = vector.load %arg2[%c0_1, %c0_2] : memref<2048x128xf32, #tpu.memory_space<vmem>>, vector<2048x128xf32>
    %cst = arith.constant dense<0.000000e+00> : vector<1x128xf32>
    %2 = tpu.matmul %0, %1, %cst {dimension_numbers = #tpu.dot_dimension_numbers<[1], [0], [0], [1], [0, 0, 1, 1], [], []>} : vector<1x2048xf32>, vector<2048x128xf32>, vector<1x128xf32> -> vector<1x128xf32>
    %c0_3 = arith.constant 0 : index
    %c0_4 = arith.constant 0 : index
    %3 = memref.load %arg3[%c0_3, %c0_4] : memref<1x1xf32, #tpu.memory_space<smem>>
    %4 = vector.broadcast %3 : f32 to vector<1x128xf32>
    %5 = arith.addf %2, %4 : vector<1x128xf32>
    %c0_5 = arith.constant 0 : index
    %c0_6 = arith.constant 0 : index
    %6 = vector.load %arg4[%c0_5, %c0_6] : memref<1x128xf32, #tpu.memory_space<vmem>>, vector<1x128xf32>
    tpu.vector_store %arg4[%c0_5, %c0_6], %5 {strides = array<i32>} : memref<1x128xf32, #tpu.memory_space<vmem>>, vector<1x128xf32>,
    return
  }
  func.func @transform_0(%arg0: i32) -> (i32, i32) {
    %c0_i32 = arith.constant 0 : i32
    %c0_i32_0 = arith.constant 0 : i32
    return %arg0, %c0_i32 : i32, i32
  }
  func.func @transform_1(%arg0: i32) -> (i32, i32) {
    %c0_i32 = arith.constant 0 : i32
    %c0_i32_0 = arith.constant 0 : i32
    %c0_i32_1 = arith.constant 0 : i32
    return %c0_i32, %c0_i32_0 : i32, i32
  }
  func.func @transform_2(%arg0: i32) -> (i32, i32) {
    %c0_i32 = arith.constant 0 : i32
    %c0_i32_0 = arith.constant 0 : i32
    %c0_i32_1 = arith.constant 0 : i32
    return %c0_i32, %c0_i32_0 : i32, i32
  }
  func.func @transform_3(%arg0: i32) -> (i32, i32) {
    %c0_i32 = arith.constant 0 : i32
    %c0_i32_0 = arith.constant 0 : i32
    return %arg0, %c0_i32 : i32, i32
  }
}

</mosaic_0001>

<bundles_post_ra>
// kernel: tpu_custom_call.1
= control target key start
LH: loop header
LB: loop body
LE: loop exit
PB: predicated region body
PF: predicated region fallthrough
CT: control target
= control target key end

     0   :  { %9 = vsyncpa [#allocation4], 0  ;;  %s1707_s0 = inlined_call_operand.hbm [shape: f32[1,2048], index: 0, kind: input, shape index: {}]   ;;  %s1708_s1 = inlined_call_operand.hbm [shape: f32[2048,128], index: 1, kind: input, shape index: {}]   ;;  %s1709_s2 = inlined_call_operand.<no memory space> [shape: f32[1,1], index: 2, kind: input, shape index: {}]   ;;  %s1710_s3 = inlined_call_operand.hbm [shape: f32[1,128], index: 3, kind: output, shape index: {}]  }
   0x1   :  { %10 = vsyncpa [#allocation7], 0 }
   0x2   :  { %11 = vsyncpa [#allocation5], 0  ;;  %s1574_s12 = smov [#allocation3]   ;;  %s1575_s14 = smov [#allocation6]  }
   0x3   :  { %s18_s13 = sshll.u32 %s1574_s12, 4  ;;  %s27_s15 = sshll.u32 %s1575_s14, 4  ;;  %s19_s13 = int_to_ptr.vmem [resolvable:$true] %s18_s13  ;;  %s1599_s15 = int_to_ptr.vmem [resolvable:$true] %s27_s15 }
   0x4   :  { %s1502_s18 = scalar_lea.hbm %s1707_s0, 256 }
   0x5   :  { %p1503_p0 = scmp.ne.s32.totalorder %s1707_s0, %s1502_s18  ;;  %p1506_p1 = scmp.lt.u32.totalorder %s1502_s18, %s1707_s0 }
   0x7   :  { %p1508_p2 = pnand %p1506_p1, %p1503_p0 }
   0x9   :  { %1511 = shalt.err (!%p1508_p2)
}
   0xa   :  { %s1512_s23 = scalar_lea.vmem %s19_s13, 256  ;;  %p1517_p4 = scmp.lt.s32.totalorder %s19_s13, %s19_s13 }
   0xb   :  { %p1513_p3 = scmp.ne.s32.totalorder %s19_s13, %s1512_s23  ;;  %p1518_p5 = scmp.lt.s32.totalorder %s1512_s23, %s1512_s23 }
   0xd   :  { %p1519_p6 = por %p1518_p5, %p1517_p4 }
   0xf   :  { %p1520_p7 = pnand %p1519_p6, %p1513_p3 }
  0x11   :  { %1523 = shalt.err (!%p1520_p7)
}
  0x12   :  { %21 = dma.hbm_to_vmem [thread:$0]  %s1707_s0, 256, %s19_s13, [#allocation4]  }
  0x13   :  { %s1524_s28 = scalar_lea.hbm %s1708_s1, 32768 }
  0x14   :  { %p1525_p8 = scmp.ne.s32.totalorder %s1708_s1, %s1524_s28  ;;  %p1528_p9 = scmp.lt.u32.totalorder %s1524_s28, %s1708_s1 }
  0x16   :  { %p1530_p10 = pnand %p1528_p9, %p1525_p8 }
  0x18   :  { %1533 = shalt.err (!%p1530_p10)
}
  0x19   :  { %s1534_s6 = scalar_lea.vmem %s1599_s15, 32768  ;;  %p1539_p12 = scmp.lt.s32.totalorder %s1599_s15, %s1599_s15 }
  0x1a   :  { %p1535_p11 = scmp.ne.s32.totalorder %s1599_s15, %s1534_s6  ;;  %p1540_p13 = scmp.lt.s32.totalorder %s1534_s6, %s1534_s6 }
  0x1c   :  { %p1541_p0 = por %p1540_p13, %p1539_p12 }
  0x1e   :  { %p1542_p1 = pnand %p1541_p0, %p1535_p11 }
  0x20   :  { %1545 = shalt.err (!%p1542_p1)
}
  0x21   :  { %s1576_s0 = smov 128   ;;  %s1577_s7 = smov 8  }
  0x22   :  { %33 = dma.hbm_to_vmem [thread:$0]  %s1708_s1, 32768, %s1599_s15, [#allocation7], %s1576_s0, %s1576_s0, %s1577_s7  }
  0x23   :  { %1568 = dma.done.wait [#allocation4], 256  }
  0x24   :  { %1569 = vsyncadd [#allocation4], 4294967040 }
  0x25   :  { %1570 = dma.done.wait [#allocation7], 32768  }
  0x26   :  { %1571 = vsyncadd [#allocation7], 4294934528  ;;  %v60_v0 = vld [vmem:[#allocation6 + $0x80] sm:$0xff]  ;;  %v61_v1 = vld [vmem:[#allocation6 + $0x88] sm:$0xff]  ;;  %v304_v47 = vlaneseq }
  0x27   :  { %v44_v2 = vld [vmem:[#allocation6] sm:$0xff]  ;;  %v1241_v3 = vpack.c.bf16 %v61_v1, %v60_v0  ;;  %v45_v4 = vld [vmem:[#allocation6 + $0x8] sm:$0xff]  ;;  %v62_v11 = vld [vmem:[#allocation6 + $0x90] sm:$0xff] }
  0x28   :  { %v92_v5 = vld [vmem:[#allocation6 + $0x180] sm:$0xff]  ;;  %v93_v6 = vld [vmem:[#allocation6 + $0x188] sm:$0xff]  ;;  %v1243_v7 = vpack.c.bf16 %v45_v4, %v44_v2  ;;  %v63_v13 = vld [vmem:[#allocation6 + $0x98] sm:$0xff]  ;;  %v1630_v61 = vshrl.u32 %v304_v47, 7 }
  0x29   :  { %v1273_v8 = vpack.c.bf16 %v93_v6, %v92_v5  ;;  %v76_v9 = vld [vmem:[#allocation6 + $0x100] sm:$0xff]  ;;  %v77_v10 = vld [vmem:[#allocation6 + $0x108] sm:$0xff]  ;;  %1242 = vmatprep.subr.bf16.mxu0 %v1241_v3  ;;  %v46_v14 = vld [vmem:[#allocation6 + $0x10] sm:$0xff]  ;;  %v1245_v16 = vpack.c.bf16 %v63_v13, %v62_v11 }
  0x2a   :  { %v1275_v12 = vpack.c.bf16 %v77_v10, %v76_v9  ;;  %v47_v15 = vld [vmem:[#allocation6 + $0x18] sm:$0xff]  ;;  %1244 = vmatpush3.bf16.msra.mxu0 %v1243_v7  ;;  %v94_v18 = vld [vmem:[#allocation6 + $0x190] sm:$0xff]  ;;  %v64_v23 = vld [vmem:[#allocation6 + $0xa0] sm:$0xff]  ;;  %v310_v10 = vsub.s32 1, %v1630_v61  ;;  %v318_v11 = vsub.s32 3, %v1630_v61 }
  0x2b   :  { %1274 = vmatprep.subr.bf16.mxu1 %v1273_v8  ;;  %v1247_v17 = vpack.c.bf16 %v47_v15, %v46_v14  ;;  %v95_v19 = vld [vmem:[#allocation6 + $0x198] sm:$0xff]  ;;  %v78_v20 = vld [vmem:[#allocation6 + $0x110] sm:$0xff]  ;;  %v65_v24 = vld [vmem:[#allocation6 + $0xa8] sm:$0xff]  ;;  %1246 = vmatprep.subr.bf16.mxu0 %v1245_v16 }
  0x2c   :  { %1276 = vmatpush3.bf16.msra.mxu1 %v1275_v12  ;;  %v1277_v21 = vpack.c.bf16 %v95_v19, %v94_v18  ;;  %v79_v22 = vld [vmem:[#allocation6 + $0x118] sm:$0xff]  ;;  %v1249_v26 = vpack.c.bf16 %v65_v24, %v64_v23  ;;  %v48_v27 = vld [vmem:[#allocation6 + $0x20] sm:$0xff]  ;;  %v49_v28 = vld [vmem:[#allocation6 + $0x28] sm:$0xff] }
  0x2d   :  { %v1279_v25 = vpack.c.bf16 %v79_v22, %v78_v20  ;;  %v96_v29 = vld [vmem:[#allocation6 + $0x1a0] sm:$0xff]  ;;  %v97_v30 = vld [vmem:[#allocation6 + $0x1a8] sm:$0xff]  ;;  %v1251_v33 = vpack.c.bf16 %v49_v28, %v48_v27  ;;  %v66_v35 = vld [vmem:[#allocation6 + $0xb0] sm:$0xff] }
  0x2e   :  { %1278 = vmatprep.subr.bf16.mxu1 %v1277_v21  ;;  %v80_v31 = vld [vmem:[#allocation6 + $0x120] sm:$0xff]  ;;  %v81_v32 = vld [vmem:[#allocation6 + $0x128] sm:$0xff]  ;;  %1248 = vmatpush3.bf16.msra.mxu0 %v1247_v17  ;;  %v1281_v34 = vpack.c.bf16 %v97_v30, %v96_v29  ;;  %v67_v36 = vld [vmem:[#allocation6 + $0xb8] sm:$0xff] }
  0x2f   :  { %v50_v37 = vld [vmem:[#allocation6 + $0x30] sm:$0xff]  ;;  %1250 = vmatprep.subr.bf16.mxu0 %v1249_v26  ;;  %v1283_v38 = vpack.c.bf16 %v81_v32, %v80_v31  ;;  %v1253_v39 = vpack.c.bf16 %v67_v36, %v66_v35  ;;  %v51_v40 = vld [vmem:[#allocation6 + $0x38] sm:$0xff]  ;;  %v68_v46 = vld [vmem:[#allocation6 + $0xc0] sm:$0xff] }
  0x30   :  { %1280 = vmatpush3.bf16.msra.mxu1 %v1279_v25  ;;  %v98_v41 = vld [vmem:[#allocation6 + $0x1b0] sm:$0xff]  ;;  %v99_v42 = vld [vmem:[#allocation6 + $0x1b8] sm:$0xff]  ;;  %v69_v48 = vld [vmem:[#allocation6 + $0xc8] sm:$0xff]  ;;  %v1255_v49 = vpack.c.bf16 %v51_v40, %v50_v37 }
  0x31   :  { %1282 = vmatprep.subr.bf16.mxu1 %v1281_v34  ;;  %v1285_v43 = vpack.c.bf16 %v99_v42, %v98_v41  ;;  %v82_v44 = vld [vmem:[#allocation6 + $0x130] sm:$0xff]  ;;  %v83_v45 = vld [vmem:[#allocation6 + $0x138] sm:$0xff]  ;;  %v100_v50 = vld [vmem:[#allocation6 + $0x1c0] sm:$0xff]  ;;  %v1257_v53 = vpack.c.bf16 %v69_v48, %v68_v46 }
  0x32   :  { %1252 = vmatpush3.bf16.msra.mxu0 %v1251_v33  ;;  %v101_v51 = vld [vmem:[#allocation6 + $0x1c8] sm:$0xff]  ;;  %v1287_v52 = vpack.c.bf16 %v83_v45, %v82_v44  ;;  %v52_v54 = vld [vmem:[#allocation6 + $0x40] sm:$0xff]  ;;  %v70_v59 = vld [vmem:[#allocation6 + $0xd0] sm:$0xff] }
  0x33   :  { %1254 = vmatprep.subr.bf16.mxu0 %v1253_v39  ;;  %v53_v55 = vld [vmem:[#allocation6 + $0x48] sm:$0xff]  ;;  %v84_v56 = vld [vmem:[#allocation6 + $0x140] sm:$0xff]  ;;  %v1289_v57 = vpack.c.bf16 %v101_v51, %v100_v50  ;;  %v71_v60 = vld [vmem:[#allocation6 + $0xd8] sm:$0xff]  ;;  %v306_v39 = vsub.s32 0, %v1630_v61 }
  0x34   :  { %1284 = vmatpush3.bf16.msra.mxu1 %v1283_v38  ;;  %v85_v58 = vld [vmem:[#allocation6 + $0x148] sm:$0xff]  ;;  %v102_v62 = vld [vmem:[#allocation6 + $0x1d0] sm:$0xff]  ;;  %v103_v63 = vld [vmem:[#allocation6 + $0x1d8] sm:$0xff]  ;;  %v1259_v0 = vpack.c.bf16 %v53_v55, %v52_v54  ;;  %v1261_v2 = vpack.c.bf16 %v71_v60, %v70_v59 }
  0x35   :  { %1286 = vmatprep.subr.bf16.mxu1 %v1285_v43  ;;  %v1291_v1 = vpack.c.bf16 %v85_v58, %v84_v56  ;;  %v54_v3 = vld [vmem:[#allocation6 + $0x50] sm:$0xff]  ;;  %v55_v4 = vld [vmem:[#allocation6 + $0x58] sm:$0xff]  ;;  %v1293_v6 = vpack.c.bf16 %v103_v63, %v102_v62  ;;  %v72_v8 = vld [vmem:[#allocation6 + $0xe0] sm:$0xff]  ;;  %v314_v43 = vsub.s32 2, %v1630_v61 }
  0x36   :  { %1256 = vmatpush3.bf16.msra.mxu0 %v1255_v49  ;;  %v86_v5 = vld [vmem:[#allocation6 + $0x150] sm:$0xff]  ;;  %v87_v7 = vld [vmem:[#allocation6 + $0x158] sm:$0xff]  ;;  %v73_v9 = vld [vmem:[#allocation6 + $0xe8] sm:$0xff]  ;;  %v1263_v14 = vpack.c.bf16 %v55_v4, %v54_v3 }
  0x37   :  { %1258 = vmatprep.subr.bf16.mxu0 %v1257_v53  ;;  %v104_v12 = vld [vmem:[#allocation6 + $0x1e0] sm:$0xff]  ;;  %v105_v13 = vld [vmem:[#allocation6 + $0x1e8] sm:$0xff]  ;;  %v1295_v16 = vpack.c.bf16 %v87_v7, %v86_v5  ;;  %v1265_v17 = vpack.c.bf16 %v73_v9, %v72_v8  ;;  %v1634_v20 = vld [vmem:[#allocation3] sm:$0xff]  ;;  %v326_v53 = vsub.s32 5, %v1630_v61 }
  0x38   :  { %1288 = vmatpush3.bf16.msra.mxu1 %v1287_v52  ;;  %v56_v15 = vld [vmem:[#allocation6 + $0x60] sm:$0xff]  ;;  %v57_v18 = vld [vmem:[#allocation6 + $0x68] sm:$0xff]  ;;  %v1297_v21 = vpack.c.bf16 %v105_v13, %v104_v12  ;;  %v74_v23 = vld [vmem:[#allocation6 + $0xf0] sm:$0xff]  ;;  %v311_v25 = vrot.slane %v1634_v20, %v310_v10  ;;  %v319_v26 = vrot.slane %v1634_v20, %v318_v11  ;;  %v307_v54 = vrot.slane %v1634_v20, %v306_v39 }
  0x39   :  { %1290 = vmatprep.subr.bf16.mxu1 %v1289_v57  ;;  %v88_v19 = vld [vmem:[#allocation6 + $0x160] sm:$0xff]  ;;  %v89_v22 = vld [vmem:[#allocation6 + $0x168] sm:$0xff]  ;;  %v75_v24 = vld [vmem:[#allocation6 + $0xf8] sm:$0xff]  ;;  %v1267_v29 = vpack.c.bf16 %v57_v18, %v56_v15  ;;  %v334_v57 = vsub.s32 7, %v1630_v61  ;;  %v315_v59 = vrot.slane %v1634_v20, %v314_v43 }
  0x3a   :  { %1260 = vmatpush3.bf16.msra.mxu0 %v1259_v0  ;;  %v106_v27 = vld [vmem:[#allocation6 + $0x1f0] sm:$0xff]  ;;  %v107_v28 = vld [vmem:[#allocation6 + $0x1f8] sm:$0xff]  ;;  %448 = vmatprep.mubr.f32.mxu0 %v311_v25  ;;  %v1299_v30 = vpack.c.bf16 %v89_v22, %v88_v19  ;;  %v1269_v31 = vpack.c.bf16 %v75_v24, %v74_v23  ;;  %v124_v37 = vld [vmem:[#allocation6 + $0x280] sm:$0xff] }
  0x3b   :  { %1262 = vmatprep.subr.bf16.mxu0 %v1261_v2  ;;  %v58_v32 = vld [vmem:[#allocation6 + $0x70] sm:$0xff]  ;;  %v59_v33 = vld [vmem:[#allocation6 + $0x78] sm:$0xff]  ;;  %v1301_v35 = vpack.c.bf16 %v107_v28, %v106_v27  ;;  %v125_v38 = vld [vmem:[#allocation6 + $0x288] sm:$0xff]  ;;  %518 = vmatprep.mubr.f32.mxu1 %v319_v26  ;;  %v335_v9 = vrot.slane %v1634_v20, %v334_v57 }
  0x3c   :  { %1292 = vmatpush3.bf16.msra.mxu1 %v1291_v1  ;;  %v90_v34 = vld [vmem:[#allocation6 + $0x170] sm:$0xff]  ;;  %v91_v36 = vld [vmem:[#allocation6 + $0x178] sm:$0xff]  ;;  %v156_v40 = vld [vmem:[#allocation6 + $0x380] sm:$0xff]  ;;  %v1271_v42 = vpack.c.bf16 %v59_v33, %v58_v32  ;;  %v1305_v45 = vpack.c.bf16 %v125_v38, %v124_v37 }
  0x3d   :  { %1294 = vmatprep.subr.bf16.mxu1 %v1293_v6  ;;  %v157_v41 = vld [vmem:[#allocation6 + $0x388] sm:$0xff]  ;;  %v1303_v44 = vpack.c.bf16 %v91_v36, %v90_v34  ;;  %v108_v46 = vld [vmem:[#allocation6 + $0x200] sm:$0xff]  ;;  %v126_v51 = vld [vmem:[#allocation6 + $0x290] sm:$0xff]  ;;  %v327_v6 = vrot.slane %v1634_v20, %v326_v53 }
  0x3e   :  { %1264 = vmatpush3.bf16.msra.mxu0 %v1263_v14  ;;  %v109_v47 = vld [vmem:[#allocation6 + $0x208] sm:$0xff]  ;;  %v140_v48 = vld [vmem:[#allocation6 + $0x300] sm:$0xff]  ;;  %v1337_v49 = vpack.c.bf16 %v157_v41, %v156_v40  ;;  %v127_v52 = vld [vmem:[#allocation6 + $0x298] sm:$0xff] }
  0x3f   :  { %1266 = vmatprep.subr.bf16.mxu0 %v1265_v17  ;;  %v141_v50 = vld [vmem:[#allocation6 + $0x308] sm:$0xff]  ;;  %v158_v55 = vld [vmem:[#allocation6 + $0x390] sm:$0xff]  ;;  %v159_v56 = vld [vmem:[#allocation6 + $0x398] sm:$0xff]  ;;  %v1307_v58 = vpack.c.bf16 %v109_v47, %v108_v46  ;;  %v1309_v62 = vpack.c.bf16 %v127_v52, %v126_v51 }
  0x40   :  { %1296 = vmatpush3.bf16.msra.mxu1 %v1295_v16  ;;  %v1339_v60 = vpack.c.bf16 %v141_v50, %v140_v48  ;;  %v110_v63 = vld [vmem:[#allocation6 + $0x210] sm:$0xff]  ;;  %v111_v0 = vld [vmem:[#allocation6 + $0x218] sm:$0xff]  ;;  %v1341_v2 = vpack.c.bf16 %v159_v56, %v158_v55  ;;  %v128_v4 = vld [vmem:[#allocation6 + $0x2a0] sm:$0xff] }
  0x41   :  { %1298 = vmatprep.subr.bf16.mxu1 %v1297_v21  ;;  %v142_v1 = vld [vmem:[#allocation6 + $0x310] sm:$0xff]  ;;  %v143_v3 = vld [vmem:[#allocation6 + $0x318] sm:$0xff]  ;;  %v129_v5 = vld [vmem:[#allocation6 + $0x2a8] sm:$0xff]  ;;  %v1311_v12 = vpack.c.bf16 %v111_v0, %v110_v63 }
  0x42   :  { %1268 = vmatpush3.bf16.msra.mxu0 %v1267_v29  ;;  %v160_v7 = vld [vmem:[#allocation6 + $0x3a0] sm:$0xff]  ;;  %v161_v8 = vld [vmem:[#allocation6 + $0x3a8] sm:$0xff]  ;;  %v1343_v13 = vpack.c.bf16 %v143_v3, %v142_v1  ;;  %v1313_v14 = vpack.c.bf16 %v129_v5, %v128_v4  ;;  %v130_v21 = vld [vmem:[#allocation6 + $0x2b0] sm:$0xff] }
  0x43   :  { %1270 = vmatprep.subr.bf16.mxu0 %v1269_v31  ;;  %v112_v15 = vld [vmem:[#allocation6 + $0x220] sm:$0xff]  ;;  %v113_v16 = vld [vmem:[#allocation6 + $0x228] sm:$0xff]  ;;  %v1345_v18 = vpack.c.bf16 %v161_v8, %v160_v7  ;;  %v131_v22 = vld [vmem:[#allocation6 + $0x2b8] sm:$0xff] }
  0x44   :  { %1300 = vmatpush3.bf16.msra.mxu1 %v1299_v30  ;;  %v144_v17 = vld [vmem:[#allocation6 + $0x320] sm:$0xff]  ;;  %v145_v19 = vld [vmem:[#allocation6 + $0x328] sm:$0xff]  ;;  %v162_v23 = vld [vmem:[#allocation6 + $0x3b0] sm:$0xff]  ;;  %v1315_v25 = vpack.c.bf16 %v113_v16, %v112_v15  ;;  %v1317_v27 = vpack.c.bf16 %v131_v22, %v130_v21 }
  0x45   :  { %1302 = vmatprep.subr.bf16.mxu1 %v1301_v35  ;;  %v163_v24 = vld [vmem:[#allocation6 + $0x3b8] sm:$0xff]  ;;  %v1347_v26 = vpack.c.bf16 %v145_v19, %v144_v17  ;;  %v114_v28 = vld [vmem:[#allocation6 + $0x230] sm:$0xff]  ;;  %v132_v33 = vld [vmem:[#allocation6 + $0x2c0] sm:$0xff] }
  0x46   :  { %1272 = vmatpush3.bf16.msra.mxu0 %v1271_v42  ;;  %v115_v29 = vld [vmem:[#allocation6 + $0x238] sm:$0xff]  ;;  %v146_v30 = vld [vmem:[#allocation6 + $0x330] sm:$0xff]  ;;  %v1349_v31 = vpack.c.bf16 %v163_v24, %v162_v23  ;;  %v133_v34 = vld [vmem:[#allocation6 + $0x2c8] sm:$0xff] }
  0x47   :  { %1306 = vmatprep.subr.bf16.mxu0 %v1305_v45  ;;  %v147_v32 = vld [vmem:[#allocation6 + $0x338] sm:$0xff]  ;;  %v164_v35 = vld [vmem:[#allocation6 + $0x3c0] sm:$0xff]  ;;  %v165_v36 = vld [vmem:[#allocation6 + $0x3c8] sm:$0xff]  ;;  %v1319_v37 = vpack.c.bf16 %v115_v29, %v114_v28  ;;  %v1321_v40 = vpack.c.bf16 %v133_v34, %v132_v33 }
  0x48   :  { %1304 = vmatpush3.bf16.msra.mxu1 %v1303_v44  ;;  %v1351_v38 = vpack.c.bf16 %v147_v32, %v146_v30  ;;  %v116_v41 = vld [vmem:[#allocation6 + $0x240] sm:$0xff]  ;;  %v117_v42 = vld [vmem:[#allocation6 + $0x248] sm:$0xff]  ;;  %v1353_v45 = vpack.c.bf16 %v165_v36, %v164_v35  ;;  %v134_v47 = vld [vmem:[#allocation6 + $0x2d0] sm:$0xff] }
  0x49   :  { %1338 = vmatprep.subr.bf16.mxu1 %v1337_v49  ;;  %449 = vmatmul.mubr.f32.vlgmr.msra.gmra.mrb[0].mxu0 %v307_v54  ;;  %v148_v44 = vld [vmem:[#allocation6 + $0x340] sm:$0xff]  ;;  %v149_v46 = vld [vmem:[#allocation6 + $0x348] sm:$0xff]  ;;  %v135_v48 = vld [vmem:[#allocation6 + $0x2d8] sm:$0xff]  ;;  %v1323_v51 = vpack.c.bf16 %v117_v42, %v116_v41 }
  0x4a   :  { %1308 = vmatpush3.bf16.msra.mxu0 %v1307_v58  ;;  %588 = vmatprep.mubr.f32.mxu0 %v327_v6  ;;  %v166_v49 = vld [vmem:[#allocation6 + $0x3d0] sm:$0xff]  ;;  %v167_v50 = vld [vmem:[#allocation6 + $0x3d8] sm:$0xff]  ;;  %v1355_v52 = vpack.c.bf16 %v149_v46, %v148_v44  ;;  %v1325_v54 = vpack.c.bf16 %v135_v48, %v134_v47  ;;  %v137_v63 = vld [vmem:[#allocation6 + $0x2e8] sm:$0xff] }
  0x4b   :  { %519 = vmatmul.mubr.f32.vlgmr.msra.gmra.mrb[0].mxu1 %v315_v59  ;;  %1310 = vmatprep.subr.bf16.mxu0 %v1309_v62  ;;  %v118_v55 = vld [vmem:[#allocation6 + $0x250] sm:$0xff]  ;;  %v119_v56 = vld [vmem:[#allocation6 + $0x258] sm:$0xff]  ;;  %v1357_v59 = vpack.c.bf16 %v167_v50, %v166_v49  ;;  %v136_v62 = vld [vmem:[#allocation6 + $0x2e0] sm:$0xff] }
  0x4c   :  { %1340 = vmatpush3.bf16.msra.mxu1 %v1339_v60  ;;  %658 = vmatprep.mubr.f32.mxu1 %v335_v9  ;;  %v150_v58 = vld [vmem:[#allocation6 + $0x350] sm:$0xff]  ;;  %v151_v60 = vld [vmem:[#allocation6 + $0x358] sm:$0xff]  ;;  %v168_v0 = vld [vmem:[#allocation6 + $0x3e0] sm:$0xff]  ;;  %v1329_v4 = vpack.c.bf16 %v137_v63, %v136_v62 }
  0x4d   :  { %1342 = vmatprep.subr.bf16.mxu1 %v1341_v2  ;;  %v169_v1 = vld [vmem:[#allocation6 + $0x3e8] sm:$0xff]  ;;  %v1327_v2 = vpack.c.bf16 %v119_v56, %v118_v55  ;;  %v1359_v3 = vpack.c.bf16 %v151_v60, %v150_v58  ;;  %v120_v5 = vld [vmem:[#allocation6 + $0x260] sm:$0xff]  ;;  %v171_v15 = vld [vmem:[#allocation6 + $0x3f8] sm:$0xff] }
  0x4e   :  { %1312 = vmatpush3.bf16.msra.mxu0 %v1311_v12  ;;  %v121_v6 = vld [vmem:[#allocation6 + $0x268] sm:$0xff]  ;;  %v152_v7 = vld [vmem:[#allocation6 + $0x360] sm:$0xff]  ;;  %v1361_v8 = vpack.c.bf16 %v169_v1, %v168_v0  ;;  %v138_v12 = vld [vmem:[#allocation6 + $0x2f0] sm:$0xff] }
  0x4f   :  { %1314 = vmatprep.subr.bf16.mxu0 %v1313_v14  ;;  %v153_v9 = vld [vmem:[#allocation6 + $0x368] sm:$0xff]  ;;  %v170_v14 = vld [vmem:[#allocation6 + $0x3f0] sm:$0xff]  ;;  %v1331_v16 = vpack.c.bf16 %v121_v6, %v120_v5  ;;  %v123_v21 = vld [vmem:[#allocation6 + $0x278] sm:$0xff] }
  0x50   :  { %1344 = vmatpush3.bf16.msra.mxu1 %v1343_v13  ;;  %v139_v13 = vld [vmem:[#allocation6 + $0x2f8] sm:$0xff]  ;;  %v1363_v17 = vpack.c.bf16 %v153_v9, %v152_v7  ;;  %v122_v19 = vld [vmem:[#allocation6 + $0x270] sm:$0xff]  ;;  %v1365_v23 = vpack.c.bf16 %v171_v15, %v170_v14  ;;  %v220_v28 = vld [vmem:[#allocation6 + $0x580] sm:$0xff] }
  0x51   :  { %1346 = vmatprep.subr.bf16.mxu1 %v1345_v18  ;;  %v1333_v18 = vpack.c.bf16 %v139_v13, %v138_v12  ;;  %v154_v22 = vld [vmem:[#allocation6 + $0x370] sm:$0xff]  ;;  %v155_v24 = vld [vmem:[#allocation6 + $0x378] sm:$0xff]  ;;  %v221_v29 = vld [vmem:[#allocation6 + $0x588] sm:$0xff]  ;;  %v1335_v30 = vpack.c.bf16 %v123_v21, %v122_v19 }
  0x52   :  { %1316 = vmatpush3.bf16.msra.mxu0 %v1315_v25  ;;  %v188_v25 = vld [vmem:[#allocation6 + $0x480] sm:$0xff]  ;;  %v1367_v32 = vpack.c.bf16 %v155_v24, %v154_v22  ;;  %v173_v35 = vld [vmem:[#allocation6 + $0x408] sm:$0xff]  ;;  %v191_v41 = vld [vmem:[#allocation6 + $0x498] sm:$0xff] }
  0x53   :  { %1318 = vmatprep.subr.bf16.mxu0 %v1317_v27  ;;  %v322_v27 = vsub.s32 4, %v1630_v61  ;;  %v172_v34 = vld [vmem:[#allocation6 + $0x400] sm:$0xff]  ;;  %v222_v44 = vld [vmem:[#allocation6 + $0x590] sm:$0xff]  ;;  %v1666_v48 = vld [vmem:[#allocation3 + $0x8] sm:$0xff] }
  0x54   :  { %1348 = vmatpush3.bf16.msra.mxu1 %v1347_v26  ;;  %v189_v26 = vld [vmem:[#allocation6 + $0x488] sm:$0xff]  ;;  %v204_v36 = vld [vmem:[#allocation6 + $0x500] sm:$0xff]  ;;  %v1371_v46 = vpack.c.bf16 %v173_v35, %v172_v34  ;;  %v207_v56 = vld [vmem:[#allocation6 + $0x518] sm:$0xff]  ;;  %v343_v60 = vrot.slane %v1666_v48, %v310_v10  ;;  %v351_v63 = vrot.slane %v1666_v48, %v318_v11 }
  0x55   :  { %1350 = vmatprep.subr.bf16.mxu1 %v1349_v31  ;;  %v330_v31 = vsub.s32 6, %v1630_v61  ;;  %v1369_v33 = vpack.c.bf16 %v189_v26, %v188_v25  ;;  %v323_v42 = vrot.slane %v1634_v20, %v322_v27  ;;  %v192_v58 = vld [vmem:[#allocation6 + $0x4a0] sm:$0xff]  ;;  %v225_v62 = vld [vmem:[#allocation6 + $0x5a8] sm:$0xff]  ;;  %v194_v7 = vld [vmem:[#allocation6 + $0x4b0] sm:$0xff] }
  0x56   :  { %1320 = vmatpush3.bf16.msra.mxu0 %v1319_v37  ;;  %v1401_v37 = vpack.c.bf16 %v221_v29, %v220_v28  ;;  %v208_v5 = vld [vmem:[#allocation6 + $0x520] sm:$0xff]  ;;  %v209_v10 = vld [vmem:[#allocation6 + $0x528] sm:$0xff]  ;;  %v226_v9 = vld [vmem:[#allocation6 + $0x5b0] sm:$0xff] }
  0x57   :  { %1322 = vmatprep.subr.bf16.mxu0 %v1321_v40  ;;  %v190_v40 = vld [vmem:[#allocation6 + $0x490] sm:$0xff]  ;;  %v331_v47 = vrot.slane %v1634_v20, %v330_v31  ;;  %v224_v20 = vld [vmem:[#allocation6 + $0x5a0] sm:$0xff]  ;;  %v227_v12 = vld [vmem:[#allocation6 + $0x5b8] sm:$0xff]  ;;  %v1411_v13 = vpack.c.bf16 %v209_v10, %v208_v5 }
  0x58   :  { %1352 = vmatpush3.bf16.msra.mxu1 %v1351_v38  ;;  %v205_v38 = vld [vmem:[#allocation6 + $0x508] sm:$0xff]  ;;  %v1373_v50 = vpack.c.bf16 %v191_v41, %v190_v40  ;;  %v1409_v6 = vpack.c.bf16 %v225_v62, %v224_v20  ;;  %v178_v15 = vld [vmem:[#allocation6 + $0x430] sm:$0xff]  ;;  %v211_v19 = vld [vmem:[#allocation6 + $0x538] sm:$0xff] }
  0x59   :  { %1354 = vmatprep.subr.bf16.mxu1 %v1353_v45  ;;  %v223_v45 = vld [vmem:[#allocation6 + $0x598] sm:$0xff]  ;;  %v1403_v49 = vpack.c.bf16 %v205_v38, %v204_v36  ;;  %v196_v21 = vld [vmem:[#allocation6 + $0x4c0] sm:$0xff]  ;;  %v197_v22 = vld [vmem:[#allocation6 + $0x4c8] sm:$0xff] }
  0x5a   :  { %1324 = vmatpush3.bf16.msra.mxu0 %v1323_v51  ;;  %v174_v51 = vld [vmem:[#allocation6 + $0x410] sm:$0xff]  ;;  %v1405_v55 = vpack.c.bf16 %v223_v45, %v222_v44  ;;  %v229_v24 = vld [vmem:[#allocation6 + $0x5c8] sm:$0xff]  ;;  %v1385_v28 = vpack.c.bf16 %v197_v22, %v196_v21  ;;  %v180_v29 = vld [vmem:[#allocation6 + $0x440] sm:$0xff] }
  0x5b   :  { %1326 = vmatprep.subr.bf16.mxu0 %v1325_v54  ;;  %v206_v54 = vld [vmem:[#allocation6 + $0x510] sm:$0xff]  ;;  %v213_v34 = vld [vmem:[#allocation6 + $0x548] sm:$0xff]  ;;  %v199_v36 = vld [vmem:[#allocation6 + $0x4d8] sm:$0xff] }
  0x5c   :  { %1356 = vmatpush3.bf16.msra.mxu1 %v1355_v52  ;;  %v175_v52 = vld [vmem:[#allocation6 + $0x418] sm:$0xff]  ;;  %v1407_v1 = vpack.c.bf16 %v207_v56, %v206_v54  ;;  %v198_v35 = vld [vmem:[#allocation6 + $0x4d0] sm:$0xff]  ;;  %v233_v54 = vld [vmem:[#allocation6 + $0x5e8] sm:$0xff] }
  0x5d   :  { %1358 = vmatprep.subr.bf16.mxu1 %v1357_v59  ;;  %v193_v59 = vld [vmem:[#allocation6 + $0x4a8] sm:$0xff]  ;;  %v1375_v0 = vpack.c.bf16 %v175_v52, %v174_v51  ;;  %v231_v38 = vld [vmem:[#allocation6 + $0x5d8] sm:$0xff]  ;;  %v182_v44 = vld [vmem:[#allocation6 + $0x450] sm:$0xff] }
  0x5e   :  { %1328 = vmatpush3.bf16.msra.mxu0 %v1327_v2  ;;  %v1377_v2 = vpack.c.bf16 %v193_v59, %v192_v58  ;;  %v183_v45 = vld [vmem:[#allocation6 + $0x458] sm:$0xff]  ;;  %v201_v51 = vld [vmem:[#allocation6 + $0x4e8] sm:$0xff]  ;;  %v232_v52 = vld [vmem:[#allocation6 + $0x5e0] sm:$0xff] }
  0x5f   :  { %1330 = vmatprep.subr.bf16.mxu0 %v1329_v4  ;;  %v177_v4 = vld [vmem:[#allocation6 + $0x428] sm:$0xff]  ;;  %v184_v59 = vld [vmem:[#allocation6 + $0x460] sm:$0xff]  ;;  %v1425_v62 = vpack.c.bf16 %v233_v54, %v232_v52  ;;  %v186_v10 = vld [vmem:[#allocation6 + $0x470] sm:$0xff] }
  0x60   :  { %1360 = vmatpush3.bf16.msra.mxu1 %v1359_v3  ;;  %v176_v3 = vld [vmem:[#allocation6 + $0x420] sm:$0xff]  ;;  %v237_v21 = vld [vmem:[#allocation6 + $0x608] sm:$0xff] }
  0x61   :  { %1362 = vmatprep.subr.bf16.mxu1 %v1361_v8  ;;  %v195_v8 = vld [vmem:[#allocation6 + $0x4b8] sm:$0xff]  ;;  %v1379_v11 = vpack.c.bf16 %v177_v4, %v176_v3  ;;  %v216_v20 = vld [vmem:[#allocation6 + $0x560] sm:$0xff]  ;;  %v241_v52 = vld [vmem:[#allocation6 + $0x628] sm:$0xff] }
  0x62   :  { %1332 = vmatpush3.bf16.msra.mxu0 %v1331_v16  ;;  %v1381_v14 = vpack.c.bf16 %v195_v8, %v194_v7  ;;  %v179_v16 = vld [vmem:[#allocation6 + $0x438] sm:$0xff]  ;;  %v218_v8 = vld [vmem:[#allocation6 + $0x570] sm:$0xff]  ;;  %v268_v22 = vld [vmem:[#allocation6 + $0x700] sm:$0xff] }
  0x63   :  { %1334 = vmatprep.subr.bf16.mxu0 %v1333_v18  ;;  %v1413_v18 = vpack.c.bf16 %v227_v12, %v226_v9  ;;  %v1383_v25 = vpack.c.bf16 %v179_v16, %v178_v15  ;;  %v235_v3 = vld [vmem:[#allocation6 + $0x5f8] sm:$0xff]  ;;  %v285_v15 = vld [vmem:[#allocation6 + $0x788] sm:$0xff]  ;;  %v272_v54 = vld [vmem:[#allocation6 + $0x720] sm:$0xff] }
  0x64   :  { %1364 = vmatpush3.bf16.msra.mxu1 %v1363_v17  ;;  %v210_v17 = vld [vmem:[#allocation6 + $0x530] sm:$0xff]  ;;  %v187_v7 = vld [vmem:[#allocation6 + $0x478] sm:$0xff] }
  0x65   :  { %1366 = vmatprep.subr.bf16.mxu1 %v1365_v23  ;;  %v228_v23 = vld [vmem:[#allocation6 + $0x5c0] sm:$0xff]  ;;  %v1415_v26 = vpack.c.bf16 %v211_v19, %v210_v17  ;;  %v219_v12 = vld [vmem:[#allocation6 + $0x578] sm:$0xff]  ;;  %v1399_v16 = vpack.c.bf16 %v187_v7, %v186_v10  ;;  %v293_v10 = vld [vmem:[#allocation6 + $0x7c8] sm:$0xff] }
  0x66   :  { %1336 = vmatpush3.bf16.msra.mxu0 %v1335_v30  ;;  %v181_v30 = vld [vmem:[#allocation6 + $0x448] sm:$0xff]  ;;  %v1431_v17 = vpack.c.bf16 %v219_v12, %v218_v8  ;;  %v236_v19 = vld [vmem:[#allocation6 + $0x600] sm:$0xff] }
  0x67   :  { %1370 = vmatprep.subr.bf16.mxu0 %v1369_v33  ;;  %v1417_v33 = vpack.c.bf16 %v229_v24, %v228_v23  ;;  %v1387_v40 = vpack.c.bf16 %v181_v30, %v180_v29  ;;  %v269_v24 = vld [vmem:[#allocation6 + $0x708] sm:$0xff]  ;;  %v286_v29 = vld [vmem:[#allocation6 + $0x790] sm:$0xff]  ;;  %v287_v30 = vld [vmem:[#allocation6 + $0x798] sm:$0xff] }
  0x68   :  { %1368 = vmatpush3.bf16.msra.mxu1 %v1367_v32  ;;  %v212_v32 = vld [vmem:[#allocation6 + $0x540] sm:$0xff] }
  0x69   :  { %1402 = vmatprep.subr.bf16.mxu1 %v1401_v37  ;;  %589 = vmatmul.mubr.f32.vlgmr.msra.gmra.mrb[2].mxu0 %v323_v42  ;;  %v230_v37 = vld [vmem:[#allocation6 + $0x5d0] sm:$0xff]  ;;  %v1419_v41 = vpack.c.bf16 %v213_v34, %v212_v32  ;;  %v1389_v42 = vpack.c.bf16 %v199_v36, %v198_v35  ;;  %v1435_v32 = vpack.c.bf16 %v237_v21, %v236_v19  ;;  %v244_v12 = vld [vmem:[#allocation6 + $0x640] sm:$0xff]  ;;  %v295_v19 = vld [vmem:[#allocation6 + $0x7d8] sm:$0xff] }
  0x6a   :  { %1372 = vmatpush3.bf16.msra.mxu0 %v1371_v46  ;;  %728 = vmatprep.mubr.f32.mxu0 %v343_v60  ;;  %v214_v46 = vld [vmem:[#allocation6 + $0x550] sm:$0xff]  ;;  %v185_v60 = vld [vmem:[#allocation6 + $0x468] sm:$0xff]  ;;  %v1467_v34 = vpack.c.bf16 %v269_v24, %v268_v22 }
  0x6b   :  { %659 = vmatmul.mubr.f32.vlgmr.msra.gmra.mrb[2].mxu1 %v331_v47  ;;  %1374 = vmatprep.subr.bf16.mxu0 %v1373_v50  ;;  %v1421_v47 = vpack.c.bf16 %v231_v38, %v230_v37  ;;  %v200_v50 = vld [vmem:[#allocation6 + $0x4e0] sm:$0xff]  ;;  %v1395_v4 = vpack.c.bf16 %v185_v60, %v184_v59  ;;  %v238_v36 = vld [vmem:[#allocation6 + $0x610] sm:$0xff]  ;;  %v239_v37 = vld [vmem:[#allocation6 + $0x618] sm:$0xff] }
  0x6c   :  { %1404 = vmatpush3.bf16.msra.mxu1 %v1403_v49  ;;  %798 = vmatprep.mubr.f32.mxu1 %v351_v63  ;;  %v215_v49 = vld [vmem:[#allocation6 + $0x558] sm:$0xff]  ;;  %v1393_v58 = vpack.c.bf16 %v201_v51, %v200_v50  ;;  %v217_v63 = vld [vmem:[#allocation6 + $0x568] sm:$0xff]  ;;  %v270_v38 = vld [vmem:[#allocation6 + $0x710] sm:$0xff] }
  0x6d   :  { %1406 = vmatprep.subr.bf16.mxu1 %v1405_v55  ;;  %v1391_v55 = vpack.c.bf16 %v183_v45, %v182_v44  ;;  %v1423_v56 = vpack.c.bf16 %v215_v49, %v214_v46  ;;  %v1427_v5 = vpack.c.bf16 %v217_v63, %v216_v20  ;;  %v359_v44 = vrot.slane %v1666_v48, %v326_v53  ;;  %v288_v45 = vld [vmem:[#allocation6 + $0x7a0] sm:$0xff]  ;;  %v289_v46 = vld [vmem:[#allocation6 + $0x7a8] sm:$0xff]  ;;  %v290_v59 = vld [vmem:[#allocation6 + $0x7b0] sm:$0xff] }
  0x6e   :  { %1376 = vmatpush3.bf16.msra.mxu0 %v1375_v0  ;;  %v202_v0 = vld [vmem:[#allocation6 + $0x4f0] sm:$0xff]  ;;  %v240_v51 = vld [vmem:[#allocation6 + $0x620] sm:$0xff]  ;;  %v273_v53 = vld [vmem:[#allocation6 + $0x728] sm:$0xff] }
  0x6f   :  { %1378 = vmatprep.subr.bf16.mxu0 %v1377_v2  ;;  %v234_v2 = vld [vmem:[#allocation6 + $0x5f0] sm:$0xff]  ;;  %v291_v60 = vld [vmem:[#allocation6 + $0x7b8] sm:$0xff]  ;;  %v1475_v20 = vpack.c.bf16 %v273_v53, %v272_v54 }
  0x70   :  { %1408 = vmatpush3.bf16.msra.mxu1 %v1407_v1  ;;  %v203_v1 = vld [vmem:[#allocation6 + $0x4f8] sm:$0xff]  ;;  %v1429_v9 = vpack.c.bf16 %v235_v3, %v234_v2  ;;  %v242_v63 = vld [vmem:[#allocation6 + $0x630] sm:$0xff]  ;;  %v1477_v2 = vpack.c.bf16 %v291_v60, %v290_v59  ;;  %v355_v59 = vrot.slane %v1666_v48, %v322_v27  ;;  %v363_v60 = vrot.slane %v1666_v48, %v330_v31 }
  0x71   :  { %1410 = vmatprep.subr.bf16.mxu1 %v1409_v6  ;;  %v1397_v6 = vpack.c.bf16 %v203_v1, %v202_v0  ;;  %v243_v0 = vld [vmem:[#allocation6 + $0x638] sm:$0xff]  ;;  %v274_v1 = vld [vmem:[#allocation6 + $0x730] sm:$0xff] }
  0x72   :  { %1380 = vmatpush3.bf16.msra.mxu0 %v1379_v11  ;;  %v252_v11 = vld [vmem:[#allocation6 + $0x680] sm:$0xff]  ;;  %v275_v3 = vld [vmem:[#allocation6 + $0x738] sm:$0xff]  ;;  %v1447_v7 = vpack.c.bf16 %v243_v0, %v242_v63  ;;  %v246_v24 = vld [vmem:[#allocation6 + $0x650] sm:$0xff] }
  0x73   :  { %1382 = vmatprep.subr.bf16.mxu0 %v1381_v14  ;;  %v284_v14 = vld [vmem:[#allocation6 + $0x780] sm:$0xff]  ;;  %v1479_v8 = vpack.c.bf16 %v275_v3, %v274_v1  ;;  %v283_v53 = vld [vmem:[#allocation6 + $0x778] sm:$0xff] }
  0x74   :  { %1412 = vmatpush3.bf16.msra.mxu1 %v1411_v13  ;;  %v253_v13 = vld [vmem:[#allocation6 + $0x688] sm:$0xff]  ;;  %v1465_v23 = vpack.c.bf16 %v285_v15, %v284_v14 }
  0x75   :  { %1414 = vmatprep.subr.bf16.mxu1 %v1413_v18  ;;  %v1433_v18 = vpack.c.bf16 %v253_v13, %v252_v11  ;;  %v245_v11 = vld [vmem:[#allocation6 + $0x648] sm:$0xff]  ;;  %v276_v13 = vld [vmem:[#allocation6 + $0x740] sm:$0xff] }
  0x76   :  { %1384 = vmatpush3.bf16.msra.mxu0 %v1383_v25  ;;  %v254_v25 = vld [vmem:[#allocation6 + $0x690] sm:$0xff]  ;;  %v277_v15 = vld [vmem:[#allocation6 + $0x748] sm:$0xff]  ;;  %v1451_v21 = vpack.c.bf16 %v245_v11, %v244_v12 }
  0x77   :  { %1386 = vmatprep.subr.bf16.mxu0 %v1385_v28  ;;  %v339_v28 = vrot.slane %v1666_v48, %v306_v39  ;;  %v257_v39 = vld [vmem:[#allocation6 + $0x6a8] sm:$0xff]  ;;  %v1483_v22 = vpack.c.bf16 %v277_v15, %v276_v13 }
  0x78   :  { %1416 = vmatpush3.bf16.msra.mxu1 %v1415_v26  ;;  %v255_v26 = vld [vmem:[#allocation6 + $0x698] sm:$0xff] }
  0x79   :  { %1418 = vmatprep.subr.bf16.mxu1 %v1417_v33  ;;  %v347_v33 = vrot.slane %v1666_v48, %v314_v43  ;;  %v1437_v35 = vpack.c.bf16 %v255_v26, %v254_v25  ;;  %v367_v43 = vrot.slane %v1666_v48, %v334_v57  ;;  %v1443_v57 = vpack.c.bf16 %v241_v52, %v240_v51  ;;  %v247_v25 = vld [vmem:[#allocation6 + $0x658] sm:$0xff]  ;;  %v278_v26 = vld [vmem:[#allocation6 + $0x750] sm:$0xff] }
  0x7a   :  { %1388 = vmatpush3.bf16.msra.mxu0 %v1387_v40  ;;  %v1469_v40 = vpack.c.bf16 %v287_v30, %v286_v29  ;;  %v279_v29 = vld [vmem:[#allocation6 + $0x758] sm:$0xff]  ;;  %v264_v30 = vld [vmem:[#allocation6 + $0x6e0] sm:$0xff]  ;;  %v250_v51 = vld [vmem:[#allocation6 + $0x670] sm:$0xff] }
  0x7b   :  { %1390 = vmatprep.subr.bf16.mxu0 %v1389_v42  ;;  %v256_v42 = vld [vmem:[#allocation6 + $0x6a0] sm:$0xff]  ;;  %v251_v52 = vld [vmem:[#allocation6 + $0x678] sm:$0xff] }
  0x7c   :  { %1420 = vmatpush3.bf16.msra.mxu1 %v1419_v41  ;;  %v271_v41 = vld [vmem:[#allocation6 + $0x718] sm:$0xff]  ;;  %v1441_v50 = vpack.c.bf16 %v257_v39, %v256_v42  ;;  %v281_v39 = vld [vmem:[#allocation6 + $0x768] sm:$0xff] }
  0x7d   :  { %1422 = vmatprep.subr.bf16.mxu1 %v1421_v47  ;;  %v1439_v47 = vpack.c.bf16 %v239_v37, %v238_v36  ;;  %v1471_v49 = vpack.c.bf16 %v271_v41, %v270_v38  ;;  %v1487_v36 = vpack.c.bf16 %v279_v29, %v278_v26  ;;  %v248_v38 = vld [vmem:[#allocation6 + $0x660] sm:$0xff] }
  0x7e   :  { %1392 = vmatpush3.bf16.msra.mxu0 %v1391_v55  ;;  %v1473_v55 = vpack.c.bf16 %v289_v46, %v288_v45  ;;  %v280_v41 = vld [vmem:[#allocation6 + $0x760] sm:$0xff]  ;;  %v267_v45 = vld [vmem:[#allocation6 + $0x6f8] sm:$0xff]  ;;  %v298_v46 = vld [vmem:[#allocation6 + $0x7f0] sm:$0xff] }
  0x7f   :  { %1394 = vmatprep.subr.bf16.mxu0 %v1393_v58  ;;  %v259_v58 = vld [vmem:[#allocation6 + $0x6b8] sm:$0xff] }
  0x80   :  { %1424 = vmatpush3.bf16.msra.mxu1 %v1423_v56  ;;  %v258_v56 = vld [vmem:[#allocation6 + $0x6b0] sm:$0xff] }
  0x81   :  { %1426 = vmatprep.subr.bf16.mxu1 %v1425_v62  ;;  %v1445_v62 = vpack.c.bf16 %v259_v58, %v258_v56  ;;  %v1463_v56 = vpack.c.bf16 %v251_v52, %v250_v51 }
  0x82   :  { %1396 = vmatpush3.bf16.msra.mxu0 %v1395_v4  ;;  %v260_v4 = vld [vmem:[#allocation6 + $0x6c0] sm:$0xff] }
  0x83   :  { %1398 = vmatprep.subr.bf16.mxu0 %v1397_v6  ;;  %v292_v6 = vld [vmem:[#allocation6 + $0x7c0] sm:$0xff] }
  0x84   :  { %1428 = vmatpush3.bf16.msra.mxu1 %v1427_v5  ;;  %v261_v5 = vld [vmem:[#allocation6 + $0x6c8] sm:$0xff]  ;;  %v1481_v14 = vpack.c.bf16 %v293_v10, %v292_v6 }
  0x85   :  { %1430 = vmatprep.subr.bf16.mxu1 %v1429_v9  ;;  %v1449_v9 = vpack.c.bf16 %v261_v5, %v260_v4 }
  0x86   :  { %1400 = vmatpush3.bf16.msra.mxu0 %v1399_v16  ;;  %v262_v16 = vld [vmem:[#allocation6 + $0x6d0] sm:$0xff] }
  0x87   :  { %1434 = vmatprep.subr.bf16.mxu0 %v1433_v18  ;;  %v294_v18 = vld [vmem:[#allocation6 + $0x7d0] sm:$0xff] }
  0x88   :  { %1432 = vmatpush3.bf16.msra.mxu1 %v1431_v17  ;;  %v263_v17 = vld [vmem:[#allocation6 + $0x6d8] sm:$0xff] }
  0x89   :  { %1466 = vmatprep.subr.bf16.mxu1 %v1465_v23  ;;  %729 = vmatmul.mubr.f32.vlgmr.msra.gmra.mrb[4].mxu0 %v339_v28  ;;  %v1453_v23 = vpack.c.bf16 %v263_v17, %v262_v16  ;;  %v1485_v28 = vpack.c.bf16 %v295_v19, %v294_v18 }
  0x8a   :  { %1436 = vmatpush3.bf16.msra.mxu0 %v1435_v32  ;;  %868 = vmatprep.mubr.f32.mxu0 %v359_v44  ;;  %v265_v32 = vld [vmem:[#allocation6 + $0x6e8] sm:$0xff]  ;;  %v266_v44 = vld [vmem:[#allocation6 + $0x6f0] sm:$0xff] }
  0x8b   :  { %799 = vmatmul.mubr.f32.vlgmr.msra.gmra.mrb[4].mxu1 %v347_v33  ;;  %1438 = vmatprep.subr.bf16.mxu0 %v1437_v35  ;;  %v296_v33 = vld [vmem:[#allocation6 + $0x7e0] sm:$0xff]  ;;  %v1455_v35 = vpack.c.bf16 %v247_v25, %v246_v24  ;;  %v1457_v37 = vpack.c.bf16 %v265_v32, %v264_v30 }
  0x8c   :  { %1468 = vmatpush3.bf16.msra.mxu1 %v1467_v34  ;;  %938 = vmatprep.mubr.f32.mxu1 %v367_v43  ;;  %v297_v34 = vld [vmem:[#allocation6 + $0x7e8] sm:$0xff]  ;;  %v299_v43 = vld [vmem:[#allocation6 + $0x7f8] sm:$0xff] }
  0x8d   :  { %1470 = vmatprep.subr.bf16.mxu1 %v1469_v40  ;;  %v249_v40 = vld [vmem:[#allocation6 + $0x668] sm:$0xff]  ;;  %v1489_v42 = vpack.c.bf16 %v297_v34, %v296_v33  ;;  %v1493_v54 = vpack.c.bf16 %v299_v43, %v298_v46 }
  0x8e   :  { %1440 = vmatpush3.bf16.msra.mxu0 %v1439_v47  ;;  %v1459_v47 = vpack.c.bf16 %v249_v40, %v248_v38 }
  0x8f   :  { %1442 = vmatprep.subr.bf16.mxu0 %v1441_v50  ;;  %v1461_v50 = vpack.c.bf16 %v267_v45, %v266_v44 }
  0x90   :  { %1472 = vmatpush3.bf16.msra.mxu1 %v1471_v49  ;;  %v1491_v49 = vpack.c.bf16 %v281_v39, %v280_v41 }
  0x91   :  { %1474 = vmatprep.subr.bf16.mxu1 %v1473_v55  ;;  %v282_v55 = vld [vmem:[#allocation6 + $0x770] sm:$0xff] }
  0x92   :  { %1444 = vmatpush3.bf16.msra.mxu0 %v1443_v57  ;;  %v1495_v58 = vpack.c.bf16 %v283_v53, %v282_v55 }
  0x93   :  { %1446 = vmatprep.subr.bf16.mxu0 %v1445_v62 }
  0x94   :  { %1476 = vmatpush3.bf16.msra.mxu1 %v1475_v20  ;;  %v301_v20 = vstv %s1709_s2  ;;  %s1578_s2 = smov [#allocation8]  }
  0x95   :  { %1478 = vmatprep.subr.bf16.mxu1 %v1477_v2  ;;  %s951_s11 = sshll.u32 %s1578_s2, 4  ;;  %s952_s11 = int_to_ptr.vmem [resolvable:$true] %s951_s11 }
  0x96   :  { %1448 = vmatpush3.bf16.msra.mxu0 %v1447_v7  ;;  %s1546_s12 = scalar_lea.vmem %s952_s11, 16  ;;  %s1550_s13 = scalar_lea.vmem %s952_s11, 32 }
  0x97   :  { %1450 = vmatprep.subr.bf16.mxu0 %v1449_v9  ;;  %p1547_p2 = scmp.ne.s32.totalorder %s952_s11, %s1546_s12  ;;  %p1551_p3 = scmp.lt.s32.totalorder %s952_s11, %s952_s11 }
  0x98   :  { %1480 = vmatpush3.bf16.msra.mxu1 %v1479_v8  ;;  %p1552_p4 = scmp.lt.s32.totalorder %s1550_s13, %s1546_s12 }
  0x99   :  { %1482 = vmatprep.subr.bf16.mxu1 %v1481_v14 }
  0x9a   :  { %1452 = vmatpush3.bf16.msra.mxu0 %v1451_v21  ;;  %p1553_p5 = por %p1552_p4, %p1551_p3 }
  0x9b   :  { %1454 = vmatprep.subr.bf16.mxu0 %v1453_v23 }
  0x9c   :  { %1484 = vmatpush3.bf16.msra.mxu1 %v1483_v22  ;;  %p1554_p6 = pnand %p1553_p5, %p1547_p2 }
  0x9d   :  { %1486 = vmatprep.subr.bf16.mxu1 %v1485_v28 }
  0x9e   :  { %1456 = vmatpush3.bf16.msra.mxu0 %v1455_v35 }
  0x9f   :  { %1458 = vmatprep.subr.bf16.mxu0 %v1457_v37 }
  0xa0   :  { %1488 = vmatpush3.bf16.msra.mxu1 %v1487_v36 }
  0xa1   :  { %1490 = vmatprep.subr.bf16.mxu1 %v1489_v42 }
  0xa2   :  { %1460 = vmatpush3.bf16.msra.mxu0 %v1459_v47 }
  0xa3   :  { %1462 = vmatprep.subr.bf16.mxu0 %v1461_v50 }
  0xa4   :  { %1492 = vmatpush3.bf16.msra.mxu1 %v1491_v49 }
  0xa5   :  { %1494 = vmatprep.subr.bf16.mxu1 %v1493_v54 }
  0xa6   :  { %1464 = vmatpush3.bf16.msra.mxu0 %v1463_v56 }
  0xa8   :  { %1496 = vmatpush3.bf16.msra.mxu1 %v1495_v58 }
  0xa9   :  { %869 = vmatmul.mubr.f32.vlgmr.msra.gmra.mrb[6].mxu0 %v355_v59 }
  0xab   :  { %939 = vmatmul.mubr.f32.vlgmr.msra.gmra.mrb[6].mxu1 %v363_v60 }
 0x11c   :  { %v993_v57 = vpop.f32.mrb[0].mxu0 }
 0x11d   :  { %v994_v62 = vpop.f32.mrb[1].mxu0 }
 0x11e   :  { %v1028_v63 = vpop.f32.mrb[0].mxu1  ;;  %v995_v0 = vadd.f32 %v994_v62, %v993_v57 }
 0x11f   :  { %v1029_v1 = vpop.f32.mrb[1].mxu1 }
 0x120   :  { %v1030_v2 = vadd.f32 %v1029_v1, %v1028_v63  ;;  %v451_v3 = vadd.f32 %v995_v0, %v301_v20 }
 0x122   :  { %v521_v27 = vadd.f32 %v1030_v2, %v451_v3 }
 0x13c   :  { %v1063_v4 = vpop.f32.mrb[2].mxu0 }
 0x13d   :  { %v1064_v5 = vpop.f32.mrb[3].mxu0 }
 0x13e   :  { %v1098_v61 = vpop.f32.mrb[2].mxu1  ;;  %v1065_v6 = vadd.f32 %v1064_v5, %v1063_v4 }
 0x13f   :  { %v1099_v31 = vpop.f32.mrb[3].mxu1 }
 0x140   :  { %v1100_v48 = vadd.f32 %v1099_v31, %v1098_v61  ;;  %v591_v10 = vadd.f32 %v1065_v6, %v521_v27 }
 0x142   :  { %v661_v7 = vadd.f32 %v1100_v48, %v591_v10 }
 0x15c   :  { %v1133_v8 = vpop.f32.mrb[4].mxu0 }
 0x15d   :  { %v1134_v9 = vpop.f32.mrb[5].mxu0 }
 0x15e   :  { %v1168_v12 = vpop.f32.mrb[4].mxu1  ;;  %v1135_v11 = vadd.f32 %v1134_v9, %v1133_v8 }
 0x15f   :  { %v1169_v13 = vpop.f32.mrb[5].mxu1 }
 0x160   :  { %v1170_v14 = vadd.f32 %v1169_v13, %v1168_v12  ;;  %v731_v15 = vadd.f32 %v1135_v11, %v661_v7 }
 0x162   :  { %v801_v16 = vadd.f32 %v1170_v14, %v731_v15 }
 0x17c   :  { %v1203_v17 = vpop.f32.mrb[6].mxu0 }
 0x17d   :  { %v1204_v18 = vpop.f32.mrb[7].mxu0 }
 0x17e   :  { %v1238_v19 = vpop.f32.mrb[6].mxu1  ;;  %v1205_v21 = vadd.f32 %v1204_v18, %v1203_v17 }
 0x17f   :  { %v1239_v22 = vpop.f32.mrb[7].mxu1 }
 0x180   :  { %v1240_v23 = vadd.f32 %v1239_v22, %v1238_v19  ;;  %v871_v24 = vadd.f32 %v1205_v21, %v801_v16 }
 0x182   :  { %v941_v25 = vadd.f32 %v1240_v23, %v871_v24 }
 0x184   :  { %944 = vst [vmem:[#allocation8] sm:$0x1] %v941_v25 }
 0x185   :  { %1557 = shalt.err (!%p1554_p6)
}
 0x186   :  { %s1558_s16 = scalar_lea.hbm %s1710_s3, 16 }
 0x187   :  { %p1559_p7 = scmp.ne.s32.totalorder %s1710_s3, %s1558_s16  ;;  %p1562_p8 = scmp.lt.u32.totalorder %s1558_s16, %s1710_s3 }
 0x189   :  { %p1564_p9 = pnand %p1562_p8, %p1559_p7 }
 0x18b   :  { %1567 = shalt.err (!%p1564_p9)
}
 0x18c   :  { %954 = dma.vmem_to_hbm [thread:$0]  %s952_s11, 16, %s1710_s3, [#allocation5]  }
 0x18d   :  { %1572 = dma.done.wait [#allocation5], 16  }
 0x18e   :  { %1573 = vsyncadd [#allocation5], 4294967280 }
 0x18f   :  { %958 = vsyncpa [#allocation4], 1 }
 0x190   :  { %959 = vsyncpa [#allocation7], 1 }
 0x191   :  { %960 = vsyncpa [#allocation5], 1 }

</bundles_post_ra>
